<compile_context>
chip_gen: v7x
topology: tpu7x:2x2x1
jax: 0.10.0
libtpu: 0.0.40
codegen_flags: <defaults>
</compile_context>

<pallas_src>
import math

import jax
import jax.numpy as jnp
from jax.experimental import pallas as pl
from jax.experimental.pallas import tpu as pltpu


def make_positional_encoding(d_model: int, max_len: int = 500) -> jnp.ndarray:
    """Sinusoidal table identical to the PyTorch __init__ buffer: (max_len, d_model)."""
    assert d_model % 2 == 0, "d_model must be even (matches the PyTorch reference)"
    position = jnp.arange(0.0, max_len, dtype=jnp.float32)[:, None]            # (max_len, 1)
    div_term = jnp.exp(
        jnp.arange(0.0, d_model, 2, dtype=jnp.float32)
        * -(math.log(10000.0) / d_model)
    )                                                                           # (d_model/2,)
    pe = jnp.zeros((max_len, d_model), dtype=jnp.float32)
    pe = pe.at[:, 0::2].set(jnp.sin(position * div_term))
    pe = pe.at[:, 1::2].set(jnp.cos(position * div_term))
    return pe


# ---------------------------------------------------------------------------
# Kernels
# ---------------------------------------------------------------------------

def _pe_add_rows_kernel(x_ref, pe_ref, o_ref):
    # x_ref / o_ref: (1, TR, 128) fully dense tiles; pe_ref: (TR, 128).
    o_ref[0] = (x_ref[0] + pe_ref[...]).astype(o_ref.dtype)


def _pe_add_full_kernel(x_ref, pe_ref, o_ref):
    # Small-shape fallback: x_ref/o_ref (B, F); pe_ref (1, F) broadcast over batch.
    o_ref[...] = (x_ref[...] + pe_ref[...]).astype(o_ref.dtype)


# ---------------------------------------------------------------------------
# Tiling helper
# ---------------------------------------------------------------------------

def _choose_row_tile(rows: int, itemsize: int, target_bytes: int) -> int:
    """Row-chunk size TR: multiple of 8 (full sublane density), ~target_bytes per
    x tile, capped so 2 buffers x (x+out+pe) stays well under the VMEM limit,
    and split into >=2 blocks for non-tiny inputs (keeps v7x's 2nd TC busy)."""
    def cdiv(a, b):
        return -(-a // b)

    bytes_per_row = 128 * itemsize
    target_rows = max(8, ((target_bytes // bytes_per_row) // 8) * 8)
    # Safety cap: 2 buffers x 3 tiles (x, out, pe) must stay under ~40 MiB.
    cap_rows = max(8, (((40 << 20) // (6 * bytes_per_row)) // 8) * 8)
    tr = min(target_rows, cap_rows, max(8, (rows // 8) * 8))
    if cdiv(rows, tr) < 2 and rows >= 16:
        tr = ((cdiv(rows, 2) + 7) // 8) * 8
    return tr


# ---------------------------------------------------------------------------
# Module
# ---------------------------------------------------------------------------

class PositionalEncoding:
    """Pallas/TPU port of the PyTorch PositionalEncoding module (eval mode)."""

    def __init__(self, d_model: int, dropout: float = 0.0, max_len: int = 500,
                 dtype=jnp.float32):
        self.d_model = d_model
        self.max_len = max_len
        self.dropout = dropout  # TODO(synk): unused — eval-mode (identity) dropout only.
        pe = make_positional_encoding(d_model, max_len).astype(dtype)
        self.pe = pe                                     # (max_len, d_model), like the buffer
        # 128-lane flattened view, padded once so the row count is exact.
        flat = pe.reshape(-1)
        pad = (-flat.shape[0]) % 128
        if pad:
            flat = jnp.concatenate([flat, jnp.zeros((pad,), dtype=flat.dtype)])
        self.pe_flat = flat.reshape(-1, 128)             # (ceil(max_len*d_model/128), 128)

    # -- main (lane- and sublane-dense) path --------------------------------
    def _forward_rows(self, x, tile_target_bytes: int):
        B, S, D = x.shape
        rows = (S * D) // 128
        x3 = x.reshape(B, rows, 128)                     # contiguous reshape (no copy)
        tr = _choose_row_tile(rows, jnp.dtype(x.dtype).itemsize, tile_target_bytes)
        n_row_blocks = pl.cdiv(rows, tr)

        out3 = pl.pallas_call(
            _pe_add_rows_kernel,
            out_shape=jax.ShapeDtypeStruct((B, rows, 128), x.dtype),
            grid_spec=pltpu.PrefetchScalarGridSpec(
                num_scalar_prefetch=0,
                # Batch innermost: pe block index is constant across consecutive
                # iterations -> each pe tile is DMA'd from HBM once per row block.
                grid=(n_row_blocks, B),
                in_specs=[
                    pl.BlockSpec((1, tr, 128), lambda j, b: (b, j, 0)),   # x tile
                    pl.BlockSpec((tr, 128), lambda j, b: (j, 0)),         # pe tile (reused over b)
                ],
                out_specs=pl.BlockSpec((1, tr, 128), lambda j, b: (b, j, 0)),
            ),
            compiler_params=pltpu.CompilerParams(
                dimension_semantics=("parallel", "parallel"),
                vmem_limit_bytes=48 << 20,   # fits v7x's 64 MiB; plenty on v5e/v6e
            ),
        )(x3, self.pe_flat)
        return out3.reshape(B, S, D)

    # -- small / awkward-shape fallback --------------------------------------
    def _forward_small(self, x):
        B, S, D = x.shape
        F = S * D
        x2 = x.reshape(B, F)
        pe2 = self.pe[:S, :].reshape(1, F)   # tiny one-off prep (fallback shapes only)

        out2 = pl.pallas_call(
            _pe_add_full_kernel,
            out_shape=jax.ShapeDtypeStruct((B, F), x.dtype),
            grid_spec=pltpu.PrefetchScalarGridSpec(
                num_scalar_prefetch=0,
                grid=(1,),
                in_specs=[
                    pl.BlockSpec((B, F), lambda i: (0, 0)),
                    pl.BlockSpec((1, F), lambda i: (0, 0)),
                ],
                out_specs=pl.BlockSpec((B, F), lambda i: (0, 0)),
            ),
            compiler_params=pltpu.CompilerParams(
                dimension_semantics=("arbitrary",),
                vmem_limit_bytes=48 << 20,
            ),
        )(x2, pe2)
        return out2.reshape(B, S, D)

    def __call__(self, x, *, tile_target_bytes: int = 4 << 20):
        B, S, D = x.shape
        assert D == self.d_model, f"x d_model={D} != table d_model={self.d_model}"
        assert S <= self.max_len, f"sequence length {S} exceeds max_len={self.max_len}"
        F = S * D
        if F % 128 == 0 and (F // 128) >= 8:
            return self._forward_rows(x, tile_target_bytes)
        return self._forward_small(x)


# ---------------------------------------------------------------------------
# Self-test
# ---------------------------------------------------------------------------

if __name__ == "__main__":
    root = jax.random.PRNGKey(0)
    k1, k2, k3 = jax.random.split(root, 3)

    # 1) Small shape consistent with the module (fallback path): B=2, S=8, d_model=32.
    B, S, D = 2, 8, 32
    mod = PositionalEncoding(d_model=D, dropout=0.1, max_len=500)
    x = jax.random.normal(k1, (B, S, D), dtype=jnp.float32)
    out = jax.block_until_ready(mod(x))
    ref = x + mod.pe[None, :S, :]
    assert out.shape == (B, S, D)
    assert jnp.allclose(out, ref, atol=1e-6, rtol=1e-6), "mismatch vs reference (small)"

    # 2) Dense row path, multiple row blocks per batch (exercises pe-tile reuse
    #    across the inner batch axis and multi-step pipelining).
    B2, S2, D2 = 2, 512, 128
    mod2 = PositionalEncoding(d_model=D2, max_len=512)
    x2 = jax.random.normal(k2, (B2, S2, D2), dtype=jnp.float32)
    out2 = jax.block_until_ready(mod2(x2, tile_target_bytes=64 << 10))
    ref2 = x2 + mod2.pe[None, :S2, :]
    assert jnp.allclose(out2, ref2, atol=1e-6, rtol=1e-6), "mismatch vs reference (row-tiled)"

    # 3) Row path with a ragged last row block (rows=40 with TR=16 -> masked tail).
    B3, S3, D3 = 3, 40, 128
    mod3 = PositionalEncoding(d_model=D3, max_len=500)
    x3 = jax.random.normal(k3, (B3, S3, D3), dtype=jnp.float32)
    out3 = jax.block_until_ready(mod3(x3, tile_target_bytes=8 << 10))
    ref3 = x3 + mod3.pe[None, :S3, :]
    assert jnp.allclose(out3, ref3, atol=1e-6, rtol=1e-6), "mismatch vs reference (ragged)"

    print("KERNEL_OK")
</pallas_src>

<mosaic_0001>
module attributes {stable_mosaic.version = 11 : i64} {
  func.func @_pe_add_full_kernel(%arg0: i32, %arg1: memref<2x256xf32, #tpu.memory_space<vmem>>, %arg2: memref<1x256xf32, #tpu.memory_space<vmem>>, %arg3: memref<2x256xf32, #tpu.memory_space<vmem>>) attributes {dimension_semantics = [#tpu.dimension_semantics<arbitrary>], iteration_bounds = array<i64: 1>, scalar_prefetch = 0 : i64, scratch_operands = 0 : i64, tpu.core_type = #tpu.core_type<tc>, window_params = [{pipeline_mode = #tpu.pipeline_mode<synchronous>, transform_indices = @transform_0, window_bounds = array<i64: 2, 256>}, {pipeline_mode = #tpu.pipeline_mode<synchronous>, transform_indices = @transform_1, window_bounds = array<i64: 1, 256>}, {pipeline_mode = #tpu.pipeline_mode<synchronous>, transform_indices = @transform_2, window_bounds = array<i64: 2, 256>}]} {
    %c0 = arith.constant 0 : index
    %c0_0 = arith.constant 0 : index
    %0 = vector.load %arg1[%c0, %c0_0] : memref<2x256xf32, #tpu.memory_space<vmem>>, vector<2x256xf32>
    %c0_1 = arith.constant 0 : index
    %c0_2 = arith.constant 0 : index
    %1 = vector.load %arg2[%c0_1, %c0_2] : memref<1x256xf32, #tpu.memory_space<vmem>>, vector<1x256xf32>
    %2 = vector.broadcast %1 : vector<1x256xf32> to vector<2x256xf32>
    %3 = arith.addf %0, %2 : vector<2x256xf32>
    %c0_3 = arith.constant 0 : index
    %c0_4 = arith.constant 0 : index
    %4 = vector.load %arg3[%c0_3, %c0_4] : memref<2x256xf32, #tpu.memory_space<vmem>>, vector<2x256xf32>
    tpu.vector_store %arg3[%c0_3, %c0_4], %3 {strides = array<i32>} : memref<2x256xf32, #tpu.memory_space<vmem>>, vector<2x256xf32>,
    return
  }
  func.func @transform_0(%arg0: i32) -> (i32, i32) {
    %c0_i32 = arith.constant 0 : i32
    %c0_i32_0 = arith.constant 0 : i32
    %c0_i32_1 = arith.constant 0 : i32
    return %c0_i32, %c0_i32_0 : i32, i32
  }
  func.func @transform_1(%arg0: i32) -> (i32, i32) {
    %c0_i32 = arith.constant 0 : i32
    %c0_i32_0 = arith.constant 0 : i32
    %c0_i32_1 = arith.constant 0 : i32
    return %c0_i32, %c0_i32_0 : i32, i32
  }
  func.func @transform_2(%arg0: i32) -> (i32, i32) {
    %c0_i32 = arith.constant 0 : i32
    %c0_i32_0 = arith.constant 0 : i32
    %c0_i32_1 = arith.constant 0 : i32
    return %c0_i32, %c0_i32_0 : i32, i32
  }
}

</mosaic_0001>

<bundles_post_ra>
// kernel: tpu_custom_call.1
= control target key start
LH: loop header
LB: loop body
LE: loop exit
PB: predicated region body
PF: predicated region fallthrough
CT: control target
= control target key end

     0   :  { %7 = vsyncpa [#allocation3], 0  ;;  %s157_s0 = inlined_call_operand.hbm [shape: f32[2,256], index: 0, kind: input, shape index: {}]   ;;  %s158_s1 = inlined_call_operand.vmem [shape: f32[1,256], index: 1, kind: input, shape index: {}]   ;;  %s159_s2 = inlined_call_operand.hbm [shape: f32[2,256], index: 2, kind: output, shape index: {}]  }
   0x1   :  { %8 = vsyncpa [#allocation4], 0  ;;  %s112_s9 = smov [#allocation2]   ;;  %s64_s13 = scalar_lea.hbm %s157_s0, 64 }
   0x2   :  { %s15_s10 = sshll.u32 %s112_s9, 4  ;;  %p65_p0 = scmp.ne.s32.totalorder %s157_s0, %s64_s13  ;;  %s16_s10 = int_to_ptr.vmem [resolvable:$true] %s15_s10 }
   0x3   :  { %p68_p1 = scmp.lt.u32.totalorder %s64_s13, %s157_s0 }
   0x5   :  { %p70_p2 = pnand %p68_p1, %p65_p0 }
   0x7   :  { %73 = shalt.err (!%p70_p2)
}
   0x8   :  { %s74_s18 = scalar_lea.vmem %s16_s10, 64  ;;  %p79_p4 = scmp.lt.s32.totalorder %s16_s10, %s16_s10 }
   0x9   :  { %p75_p3 = scmp.ne.s32.totalorder %s16_s10, %s74_s18  ;;  %p80_p5 = scmp.lt.s32.totalorder %s74_s18, %s74_s18 }
   0xb   :  { %p81_p6 = por %p80_p5, %p79_p4 }
   0xd   :  { %p82_p7 = pnand %p81_p6, %p75_p3 }
   0xf   :  { %85 = shalt.err (!%p82_p7)
}
  0x10   :  { %18 = dma.hbm_to_vmem [thread:$0]  %s157_s0, 64, %s16_s10, [#allocation3]  }
  0x11   :  { %108 = dma.done.wait [#allocation3], 64  }
  0x12   :  { %109 = vsyncadd [#allocation3], 4294967232  ;;  %v27_v0 = vlaneseq  ;;  %v113_v1 = vmov 1983009808   ;;  %v25_v7 = vld [vmem:[%s158_s1] sm:$0x3] }
  0x13   :  { %v37_v2 = vunpack.c.l.s4 %v113_v1  ;;  %v24_v12 = vld [vmem:[#allocation2] sm:$0xf]  ;;  %s114_s23 = smov [#allocation5]  }
  0x14   :  { %v28_v3 = vshrl.u32 %v27_v0, 7  ;;  %s52_s0 = sshll.u32 %s114_s23, 4  ;;  %s53_s0 = int_to_ptr.vmem [resolvable:$true] %s52_s0 }
  0x15   :  { %v38_v6 = vunpack.c.0.s8 %v37_v2  ;;  %s86_s24 = scalar_lea.vmem %s53_s0, 64  ;;  %p91_p9 = scmp.lt.s32.totalorder %s53_s0, %s53_s0 }
  0x16   :  { %v29_v4 = vsub.s32 0, %v28_v3  ;;  %v33_v5 = vsub.s32 1, %v28_v3  ;;  %p87_p8 = scmp.ne.s32.totalorder %s53_s0, %s86_s24  ;;  %p92_p10 = scmp.lt.s32.totalorder %s86_s24, %s86_s24 }
  0x17   :  { %v41_v10 = vsub.s32 %v38_v6, %v28_v3 }
  0x18   :  { %v30_v8 = vrot.slane %v25_v7, %v29_v4  ;;  %v34_v9 = vrot.slane %v25_v7, %v33_v5  ;;  %p93_p11 = por %p92_p10, %p91_p9 }
  0x1a   :  { %v35_v11 = vcombine.low %v30_v8, %v34_v9  ;;  %p94_p12 = pnand %p93_p11, %p87_p8 }
  0x1c   :  { %v42_v13 = vrot.slane %v35_v11, %v41_v10 }
  0x1e   :  { %v44_v14 = vadd.f32 %v42_v13, %v24_v12 }
  0x20   :  { %45 = vst [vmem:[#allocation5] sm:$0xf] %v44_v14 }
  0x21   :  { %97 = shalt.err (!%p94_p12)
}
  0x22   :  { %s98_s26 = scalar_lea.hbm %s159_s2, 64 }
  0x23   :  { %p99_p13 = scmp.ne.s32.totalorder %s159_s2, %s98_s26  ;;  %p102_p0 = scmp.lt.u32.totalorder %s98_s26, %s159_s2 }
  0x25   :  { %p104_p1 = pnand %p102_p0, %p99_p13 }
  0x27   :  { %107 = shalt.err (!%p104_p1)
}
  0x28   :  { %55 = dma.vmem_to_hbm [thread:$0]  %s53_s0, 64, %s159_s2, [#allocation4]  }
  0x29   :  { %110 = dma.done.wait [#allocation4], 64  }
  0x2a   :  { %111 = vsyncadd [#allocation4], 4294967232 }
  0x2b   :  { %59 = vsyncpa [#allocation3], 1 }
  0x2c   :  { %60 = vsyncpa [#allocation4], 1 }

</bundles_post_ra>
